<compile_context>
chip_gen: v6e
topology: v6e:2x2x1
jax: 0.10.0
libtpu: 0.0.40
codegen_flags: <defaults>
</compile_context>

<pallas_src>
import jax
import jax.numpy as jnp
from jax.experimental import pallas as pl
from jax.experimental.pallas import tpu as pltpu

HIDDEN = 6
LANES = 128
SUBLANES = 8


def mlp_kernel(params_ref, x_ref, o_ref):
    # params_ref: (19,) f32 in SMEM: [w1(6) | b1(6) | w2(6) | b2(1)]
    # x_ref/o_ref: (tr, 128) lane-dense view of the flattened batch.
    x = x_ref[...].astype(jnp.float32)
    acc = jnp.full(x.shape, params_ref[3 * HIDDEN], dtype=jnp.float32)  # b2
    for j in range(HIDDEN):  # fully unrolled at trace time
        h = x * params_ref[j] + params_ref[HIDDEN + j]                   # fc1 (in_features=1)
        acc = acc + jnp.maximum(h, 0.0) * params_ref[2 * HIDDEN + j]     # relu + fc2
    o_ref[...] = acc.astype(o_ref.dtype)


def mlp_forward(x, w1, b1, w2, b2, *, tile_rows=4096, io_dtype=None):
    """Forward pass of MLPModel in one Pallas kernel.

    x:  (..., 1) input (PyTorch nn.Linear(1, 6) convention).
    w1: (6, 1) fc1.weight, b1: (6,) fc1.bias
    w2: (1, 6) fc2.weight, b2: (1,) fc2.bias
    io_dtype: optional streaming dtype (e.g. jnp.bfloat16) to halve HBM traffic;
              compute is always f32 inside the kernel.
    Returns an array with the same shape as x (dtype = io_dtype or x.dtype).
    """
    orig_shape = x.shape
    n = x.size  # in_features == 1, so #elements == batch size

    # Pack all parameters into one small f32 vector for SMEM.
    params = jnp.concatenate(
        [w1.reshape(-1), b1.reshape(-1), w2.reshape(-1), b2.reshape(-1)]
    ).astype(jnp.float32)

    # Lane-dense view: pad only the ragged tail up to a (rows, 128) slab with
    # rows a multiple of 8 (sublane alignment). No rounding up to the tile size:
    # the grid uses a partial last block instead, so for aligned batches the pad
    # and the trailing slice below fold to no-ops.
    chunk = SUBLANES * LANES  # 1024
    n_padded = ((n + chunk - 1) // chunk) * chunk
    rows = n_padded // LANES

    xf = x.reshape(-1)
    if io_dtype is not None:
        xf = xf.astype(io_dtype)
    if n_padded != n:
        xf = jnp.pad(xf, (0, n_padded - n))
    x2 = xf.reshape(rows, LANES)

    # Tile height: multiple of 8, at most `rows`, capped at 8192 (<= 16 MiB of
    # double-buffered in+out f32 buffers -> fits v5e/v6e/v7x scoped VMEM).
    tr = min(tile_rows, rows, 8192)
    tr = max(SUBLANES, (tr // SUBLANES) * SUBLANES)
    grid = (pl.cdiv(rows, tr),)

    out2 = pl.pallas_call(
        mlp_kernel,
        out_shape=jax.ShapeDtypeStruct((rows, LANES), x2.dtype),
        grid=grid,
        in_specs=[
            pl.BlockSpec(memory_space=pltpu.MemorySpace.SMEM),  # packed params
            pl.BlockSpec((tr, LANES), lambda i: (i, 0)),        # x tile
        ],
        out_specs=pl.BlockSpec((tr, LANES), lambda i: (i, 0)),
        compiler_params=pltpu.CompilerParams(
            dimension_semantics=("parallel",),
            vmem_limit_bytes=32 << 20,
        ),
    )(params, x2)

    out_flat = out2.reshape(-1)
    if n_padded != n:
        out_flat = out_flat[:n]
    return out_flat.reshape(orig_shape)


def init_params(key):
    """torch.nn.Linear-style U(-1/sqrt(fan_in), 1/sqrt(fan_in)) init."""
    k1, k2, k3, k4 = jax.random.split(key, 4)
    bound1 = 1.0  # fan_in = 1
    w1 = jax.random.uniform(k1, (HIDDEN, 1), jnp.float32, -bound1, bound1)   # fc1.weight
    b1 = jax.random.uniform(k2, (HIDDEN,), jnp.float32, -bound1, bound1)     # fc1.bias
    bound2 = 1.0 / jnp.sqrt(float(HIDDEN))
    w2 = jax.random.uniform(k3, (1, HIDDEN), jnp.float32, -bound2, bound2)   # fc2.weight
    b2 = jax.random.uniform(k4, (1,), jnp.float32, -bound2, bound2)          # fc2.bias
    return w1, b1, w2, b2


def reference_forward(x, w1, b1, w2, b2):
    h = jnp.maximum(x @ w1.T + b1, 0.0)
    return h @ w2.T + b2


if __name__ == "__main__":
    key = jax.random.PRNGKey(0)
    pkey, xkey = jax.random.split(key)

    w1, b1, w2, b2 = init_params(pkey)

    # x: (batch=8, in_features=1), matching nn.Linear(1, 6) input.
    x = jax.random.normal(xkey, (8, 1), jnp.float32)

    out = mlp_forward(x, w1, b1, w2, b2)
    out = jax.block_until_ready(out)

    ref = reference_forward(x, w1, b1, w2, b2)
    assert out.shape == (8, 1)
    assert jnp.allclose(out, ref, atol=1e-5, rtol=1e-5)

    # Exercise the partial-last-block path with a larger, tile-unaligned batch.
    xb = jax.random.normal(xkey, (5000, 1), jnp.float32)
    outb = jax.block_until_ready(mlp_forward(xb, w1, b1, w2, b2, tile_rows=4096))
    refb = reference_forward(xb, w1, b1, w2, b2)
    assert jnp.allclose(outb, refb, atol=1e-5, rtol=1e-5)

    print("KERNEL_OK")
</pallas_src>

<mosaic_0001>
module attributes {stable_mosaic.version = 11 : i64} {
  func.func @mlp_kernel(%arg0: i32, %arg1: memref<19xf32, #tpu.memory_space<smem>>, %arg2: memref<8x128xf32, #tpu.memory_space<vmem>>, %arg3: memref<8x128xf32, #tpu.memory_space<vmem>>) attributes {dimension_semantics = [#tpu.dimension_semantics<parallel>], iteration_bounds = array<i64: 1>, scalar_prefetch = 0 : i64, scratch_operands = 0 : i64, tpu.core_type = #tpu.core_type<tc>, window_params = [{transform_indices = @transform_0, window_bounds = array<i64: 19>}, {transform_indices = @transform_1, window_bounds = array<i64: 8, 128>}, {transform_indices = @transform_2, window_bounds = array<i64: 8, 128>}]} {
    %c0 = arith.constant 0 : index
    %c0_0 = arith.constant 0 : index
    %0 = vector.load %arg2[%c0, %c0_0] : memref<8x128xf32, #tpu.memory_space<vmem>>, vector<8x128xf32>
    %c18 = arith.constant 18 : index
    %1 = memref.load %arg1[%c18] : memref<19xf32, #tpu.memory_space<smem>>
    %2 = vector.broadcast %1 : f32 to vector<8x128xf32>
    %c0_1 = arith.constant 0 : index
    %3 = memref.load %arg1[%c0_1] : memref<19xf32, #tpu.memory_space<smem>>
    %4 = vector.broadcast %3 : f32 to vector<8x128xf32>
    %5 = arith.mulf %0, %4 : vector<8x128xf32>
    %c6 = arith.constant 6 : index
    %6 = memref.load %arg1[%c6] : memref<19xf32, #tpu.memory_space<smem>>
    %7 = vector.broadcast %6 : f32 to vector<8x128xf32>
    %8 = arith.addf %5, %7 : vector<8x128xf32>
    %cst = arith.constant 0.000000e+00 : f32
    %9 = vector.broadcast %cst : f32 to vector<8x128xf32>
    %10 = arith.maximumf %8, %9 : vector<8x128xf32>
    %c12 = arith.constant 12 : index
    %11 = memref.load %arg1[%c12] : memref<19xf32, #tpu.memory_space<smem>>
    %12 = vector.broadcast %11 : f32 to vector<8x128xf32>
    %13 = arith.mulf %10, %12 : vector<8x128xf32>
    %14 = arith.addf %2, %13 : vector<8x128xf32>
    %c1 = arith.constant 1 : index
    %15 = memref.load %arg1[%c1] : memref<19xf32, #tpu.memory_space<smem>>
    %16 = vector.broadcast %15 : f32 to vector<8x128xf32>
    %17 = arith.mulf %0, %16 : vector<8x128xf32>
    %c7 = arith.constant 7 : index
    %18 = memref.load %arg1[%c7] : memref<19xf32, #tpu.memory_space<smem>>
    %19 = vector.broadcast %18 : f32 to vector<8x128xf32>
    %20 = arith.addf %17, %19 : vector<8x128xf32>
    %cst_2 = arith.constant 0.000000e+00 : f32
    %21 = vector.broadcast %cst_2 : f32 to vector<8x128xf32>
    %22 = arith.maximumf %20, %21 : vector<8x128xf32>
    %c13 = arith.constant 13 : index
    %23 = memref.load %arg1[%c13] : memref<19xf32, #tpu.memory_space<smem>>
    %24 = vector.broadcast %23 : f32 to vector<8x128xf32>
    %25 = arith.mulf %22, %24 : vector<8x128xf32>
    %26 = arith.addf %14, %25 : vector<8x128xf32>
    %c2 = arith.constant 2 : index
    %27 = memref.load %arg1[%c2] : memref<19xf32, #tpu.memory_space<smem>>
    %28 = vector.broadcast %27 : f32 to vector<8x128xf32>
    %29 = arith.mulf %0, %28 : vector<8x128xf32>
    %c8 = arith.constant 8 : index
    %30 = memref.load %arg1[%c8] : memref<19xf32, #tpu.memory_space<smem>>
    %31 = vector.broadcast %30 : f32 to vector<8x128xf32>
    %32 = arith.addf %29, %31 : vector<8x128xf32>
    %cst_3 = arith.constant 0.000000e+00 : f32
    %33 = vector.broadcast %cst_3 : f32 to vector<8x128xf32>
    %34 = arith.maximumf %32, %33 : vector<8x128xf32>
    %c14 = arith.constant 14 : index
    %35 = memref.load %arg1[%c14] : memref<19xf32, #tpu.memory_space<smem>>
    %36 = vector.broadcast %35 : f32 to vector<8x128xf32>
    %37 = arith.mulf %34, %36 : vector<8x128xf32>
    %38 = arith.addf %26, %37 : vector<8x128xf32>
    %c3 = arith.constant 3 : index
    %39 = memref.load %arg1[%c3] : memref<19xf32, #tpu.memory_space<smem>>
    %40 = vector.broadcast %39 : f32 to vector<8x128xf32>
    %41 = arith.mulf %0, %40 : vector<8x128xf32>
    %c9 = arith.constant 9 : index
    %42 = memref.load %arg1[%c9] : memref<19xf32, #tpu.memory_space<smem>>
    %43 = vector.broadcast %42 : f32 to vector<8x128xf32>
    %44 = arith.addf %41, %43 : vector<8x128xf32>
    %cst_4 = arith.constant 0.000000e+00 : f32
    %45 = vector.broadcast %cst_4 : f32 to vector<8x128xf32>
    %46 = arith.maximumf %44, %45 : vector<8x128xf32>
    %c15 = arith.constant 15 : index
    %47 = memref.load %arg1[%c15] : memref<19xf32, #tpu.memory_space<smem>>
    %48 = vector.broadcast %47 : f32 to vector<8x128xf32>
    %49 = arith.mulf %46, %48 : vector<8x128xf32>
    %50 = arith.addf %38, %49 : vector<8x128xf32>
    %c4 = arith.constant 4 : index
    %51 = memref.load %arg1[%c4] : memref<19xf32, #tpu.memory_space<smem>>
    %52 = vector.broadcast %51 : f32 to vector<8x128xf32>
    %53 = arith.mulf %0, %52 : vector<8x128xf32>
    %c10 = arith.constant 10 : index
    %54 = memref.load %arg1[%c10] : memref<19xf32, #tpu.memory_space<smem>>
    %55 = vector.broadcast %54 : f32 to vector<8x128xf32>
    %56 = arith.addf %53, %55 : vector<8x128xf32>
    %cst_5 = arith.constant 0.000000e+00 : f32
    %57 = vector.broadcast %cst_5 : f32 to vector<8x128xf32>
    %58 = arith.maximumf %56, %57 : vector<8x128xf32>
    %c16 = arith.constant 16 : index
    %59 = memref.load %arg1[%c16] : memref<19xf32, #tpu.memory_space<smem>>
    %60 = vector.broadcast %59 : f32 to vector<8x128xf32>
    %61 = arith.mulf %58, %60 : vector<8x128xf32>
    %62 = arith.addf %50, %61 : vector<8x128xf32>
    %c5 = arith.constant 5 : index
    %63 = memref.load %arg1[%c5] : memref<19xf32, #tpu.memory_space<smem>>
    %64 = vector.broadcast %63 : f32 to vector<8x128xf32>
    %65 = arith.mulf %0, %64 : vector<8x128xf32>
    %c11 = arith.constant 11 : index
    %66 = memref.load %arg1[%c11] : memref<19xf32, #tpu.memory_space<smem>>
    %67 = vector.broadcast %66 : f32 to vector<8x128xf32>
    %68 = arith.addf %65, %67 : vector<8x128xf32>
    %cst_6 = arith.constant 0.000000e+00 : f32
    %69 = vector.broadcast %cst_6 : f32 to vector<8x128xf32>
    %70 = arith.maximumf %68, %69 : vector<8x128xf32>
    %c17 = arith.constant 17 : index
    %71 = memref.load %arg1[%c17] : memref<19xf32, #tpu.memory_space<smem>>
    %72 = vector.broadcast %71 : f32 to vector<8x128xf32>
    %73 = arith.mulf %70, %72 : vector<8x128xf32>
    %74 = arith.addf %62, %73 : vector<8x128xf32>
    %c0_7 = arith.constant 0 : index
    %c0_8 = arith.constant 0 : index
    %75 = vector.load %arg3[%c0_7, %c0_8] : memref<8x128xf32, #tpu.memory_space<vmem>>, vector<8x128xf32>
    tpu.vector_store %arg3[%c0_7, %c0_8], %74 {strides = array<i32>} : memref<8x128xf32, #tpu.memory_space<vmem>>, vector<8x128xf32>,
    return
  }
  func.func @transform_0(%arg0: i32) -> i32 {
    %c0_i32 = arith.constant 0 : i32
    %c0_i32_0 = arith.constant 0 : i32
    return %c0_i32 : i32
  }
  func.func @transform_1(%arg0: i32) -> (i32, i32) {
    %c0_i32 = arith.constant 0 : i32
    %c0_i32_0 = arith.constant 0 : i32
    return %arg0, %c0_i32 : i32, i32
  }
  func.func @transform_2(%arg0: i32) -> (i32, i32) {
    %c0_i32 = arith.constant 0 : i32
    %c0_i32_0 = arith.constant 0 : i32
    return %arg0, %c0_i32 : i32, i32
  }
}

</mosaic_0001>

<bundles_post_ra>
// kernel: tpu_custom_call.1
= control target key start
LH: loop header
LB: loop body
LE: loop exit
PB: predicated region body
PF: predicated region fallthrough
CT: control target
= control target key end

     0   :  { %7 = vsyncpa [#allocation5], 0  ;;  %s235_s0 = inlined_call_operand.hbm [shape: f32[19], index: 0, kind: input, shape index: {}]   ;;  %s236_s1 = inlined_call_operand.hbm [shape: f32[8,128], index: 1, kind: input, shape index: {}]   ;;  %s237_s2 = inlined_call_operand.hbm [shape: f32[8,128], index: 2, kind: output, shape index: {}]  }
   0x1   :  { %8 = vsyncpa [#allocation3], 0 }
   0x2   :  { %9 = vsyncpa [#allocation4], 0  ;;  %s196_s9 = smov [#allocation2]   ;;  %s197_s12 = smov [#allocation6]  }
   0x3   :  { %17 = dma.hbm_to_smem %s235_s0, 16, %s196_s9, [#allocation5]  }
   0x4   :  { %s24_s13 = sshll.u32 %s197_s12, 4  ;;  %s25_s13 = int_to_ptr.vmem [resolvable:$true] %s24_s13 }
   0x5   :  { %s158_s14 = scalar_lea.vmem %s25_s13, 128  ;;  %p163_p1 = scmp.lt.s32.totalorder %s25_s13, %s25_s13 }
   0x6   :  { %p159_p0 = scmp.ne.s32.totalorder %s25_s13, %s158_s14  ;;  %p164_p2 = scmp.lt.s32.totalorder %s158_s14, %s158_s14 }
   0x8   :  { %p165_p3 = por %p164_p2, %p163_p1 }
   0xa   :  { %p166_p4 = pnand %p165_p3, %p159_p0 }
   0xc   :  { %169 = shalt.err (!%p166_p4)
}
   0xd   :  { %27 = dma.hbm_to_vmem [thread:$0]  %s236_s1, 128, %s25_s13, [#allocation3]  }
   0xe   :  { %190 = dma.done.wait [#allocation5], 16  }
   0xf   :  { %191 = vsyncadd [#allocation5], 4294967280 }
  0x10   :  { %192 = dma.done.wait [#allocation3], 128  }
  0x11   :  { %193 = vsyncadd [#allocation3], 4294967168 }
  0x12   :  { %34 = sfence }
  0x13   :  { %s220_s0 = sld [smem:[#allocation2 + $0x12]]  ;;  %v35_v0 = vld [vmem:[#allocation6] sm:$0xff]  ;;  %s198_s6 = smov [#allocation7]  }
  0x14   :  { %s38_s17 = sld [smem:[#allocation2]]  ;;  %s111_s7 = sshll.u32 %s198_s6, 4  ;;  %s112_s7 = int_to_ptr.vmem [resolvable:$true] %s111_s7 }
  0x15   :  { %s122_s18 = sld [smem:[#allocation2 + $0x6]]  ;;  %s170_s8 = scalar_lea.vmem %s112_s7, 128 }
  0x16   :  { %s123_s19 = sld [smem:[#allocation2 + $0xc]]  ;;  %p171_p5 = scmp.ne.s32.totalorder %s112_s7, %s170_s8 }
  0x17   :  { %s124_s20 = sld [smem:[#allocation2 + $0x1]]  ;;  %p175_p6 = scmp.lt.s32.totalorder %s112_s7, %s112_s7 }
  0x18   :  { %s125_s21 = sld [smem:[#allocation2 + $0x7]]  ;;  %p176_p7 = scmp.lt.s32.totalorder %s170_s8, %s170_s8 }
  0x19   :  { %s222_s22 = sld [smem:[#allocation2 + $0xd]]  ;;  %v37_v10 = vstv %s220_s0 }
  0x1a   :  { %v39_v1 = vstv %s38_s17  ;;  %s127_s23 = sld [smem:[#allocation2 + $0x2]]  ;;  %p177_p8 = por %p176_p7, %p175_p6 }
  0x1b   :  { %v40_v2 = vmul.f32 %v39_v1, %v35_v0  ;;  %v42_v3 = vstv %s122_s18  ;;  %s128_s1 = sld [smem:[#allocation2 + $0x8]] }
  0x1c   :  { %s224_s24 = sld [smem:[#allocation2 + $0xe]]  ;;  %v46_v6 = vstv %s123_s19  ;;  %p178_p9 = pnand %p177_p8, %p171_p5 }
  0x1d   :  { %v43_v4 = vadd.f32 %v42_v3, %v40_v2  ;;  %v50_v5 = vstv %s124_s20  ;;  %s130_s25 = sld [smem:[#allocation2 + $0x3]] }
  0x1e   :  { %v51_v7 = vmul.f32 %v50_v5, %v35_v0  ;;  %v53_v8 = vstv %s125_s21  ;;  %s131_s26 = sld [smem:[#allocation2 + $0x9]] }
  0x1f   :  { %v44_v9 = vmax.f32 %v43_v4, 0.0  ;;  %s226_s27 = sld [smem:[#allocation2 + $0xf]]  ;;  %v57_v14 = vstv %s222_s22 }
  0x20   :  { %v54_v11 = vadd.f32 %v53_v8, %v51_v7  ;;  %v61_v12 = vstv %s127_s23  ;;  %s133_s28 = sld [smem:[#allocation2 + $0x4]] }
  0x21   :  { %v47_v13 = vmul.f32 %v46_v6, %v44_v9  ;;  %v62_v15 = vmul.f32 %v61_v12, %v35_v0  ;;  %v64_v16 = vstv %s128_s1  ;;  %s134_s29 = sld [smem:[#allocation2 + $0xa]] }
  0x22   :  { %v55_v17 = vmax.f32 %v54_v11, 0.0  ;;  %s135_s30 = sld [smem:[#allocation2 + $0x10]]  ;;  %v68_v22 = vstv %s224_s24 }
  0x23   :  { %v48_v18 = vadd.f32 %v47_v13, %v37_v10  ;;  %v65_v19 = vadd.f32 %v64_v16, %v62_v15  ;;  %v72_v20 = vstv %s130_s25  ;;  %s136_s3 = sld [smem:[#allocation2 + $0x5]] }
  0x24   :  { %v58_v21 = vmul.f32 %v57_v14, %v55_v17  ;;  %v73_v23 = vmul.f32 %v72_v20, %v35_v0  ;;  %v75_v24 = vstv %s131_s26  ;;  %s137_s4 = sld [smem:[#allocation2 + $0xb]] }
  0x25   :  { %v66_v25 = vmax.f32 %v65_v19, 0.0  ;;  %s138_s5 = sld [smem:[#allocation2 + $0x11]]  ;;  %v79_v30 = vstv %s226_s27 }
  0x26   :  { %v59_v26 = vadd.f32 %v58_v21, %v48_v18  ;;  %v76_v27 = vadd.f32 %v75_v24, %v73_v23  ;;  %v83_v28 = vstv %s133_s28 }
  0x27   :  { %v69_v29 = vmul.f32 %v68_v22, %v66_v25  ;;  %v84_v31 = vmul.f32 %v83_v28, %v35_v0  ;;  %v86_v32 = vstv %s134_s29 }
  0x28   :  { %v77_v33 = vmax.f32 %v76_v27, 0.0  ;;  %v90_v38 = vstv %s135_s30 }
  0x29   :  { %v70_v34 = vadd.f32 %v69_v29, %v59_v26  ;;  %v87_v35 = vadd.f32 %v86_v32, %v84_v31  ;;  %v94_v36 = vstv %s136_s3 }
  0x2a   :  { %v80_v37 = vmul.f32 %v79_v30, %v77_v33  ;;  %v95_v39 = vmul.f32 %v94_v36, %v35_v0  ;;  %v97_v40 = vstv %s137_s4 }
  0x2b   :  { %v88_v41 = vmax.f32 %v87_v35, 0.0  ;;  %v101_v45 = vstv %s138_s5 }
  0x2c   :  { %v81_v42 = vadd.f32 %v80_v37, %v70_v34  ;;  %v98_v43 = vadd.f32 %v97_v40, %v95_v39 }
  0x2d   :  { %v91_v44 = vmul.f32 %v90_v38, %v88_v41 }
  0x2e   :  { %v99_v46 = vmax.f32 %v98_v43, 0.0 }
  0x2f   :  { %v92_v47 = vadd.f32 %v91_v44, %v81_v42 }
  0x30   :  { %v102_v48 = vmul.f32 %v101_v45, %v99_v46 }
  0x32   :  { %v103_v49 = vadd.f32 %v102_v48, %v92_v47 }
  0x34   :  { %104 = vst [vmem:[#allocation7] sm:$0xff] %v103_v49 }
  0x35   :  { %181 = shalt.err (!%p178_p9)
}
  0x36   :  { %114 = dma.vmem_to_hbm [thread:$0]  %s112_s7, 128, %s237_s2, [#allocation4]  }
  0x37   :  { %194 = dma.done.wait [#allocation4], 128  }
  0x38   :  { %195 = vsyncadd [#allocation4], 4294967168 }
  0x39   :  { %118 = vsyncpa [#allocation3], 1 }
  0x3a   :  { %119 = vsyncpa [#allocation4], 1 }
  0x3b   :  { %120 = vsyncpa [#allocation5], 1 }

</bundles_post_ra>
